<compile_context>
chip_gen: v7x
topology: tpu7x:2x2x1
jax: 0.10.0
libtpu: 0.0.40
codegen_flags: <defaults>
</compile_context>

<pallas_src>
import jax
import jax.numpy as jnp
from jax.experimental import pallas as pl
from jax.experimental.pallas import tpu as pltpu

D_IN = 32            # observation dim
HID = 64             # hidden dim (MLPPolicy uses 64)
N_ACT = 6            # discrete action count (Categorical head)
WIDTH = 2 * HID      # 128: packed lane width (critic cols 0..63, actor 64..127)

# Output-slab column layout.
VALUE_COL = 0
LOGIT_COL = 1                     # cols 1 .. 1+N_ACT-1
ACTION_COL = 7
ALP_COL = 8
ENT_COL = 9
FEAT_COL = HID                    # cols 64 .. 127

# Packed-parameter row layout: [W1p (32) | W2p (128) | W3p (128) | b1,b2,b3 | pad]
W1_ROW = 0
W2_ROW = D_IN
W3_ROW = D_IN + WIDTH
B1_ROW = D_IN + 2 * WIDTH         # 288
B2_ROW = B1_ROW + 1
B3_ROW = B1_ROW + 2
P_ROWS = 296                      # 291 used rows padded to a multiple of 8


def _policy_kernel(x_ref, p_ref, out_ref):
    x = x_ref[...]                                         # [TB, 32]
    W1 = p_ref[W1_ROW:W1_ROW + D_IN, :]                    # [32, 128]
    W2 = p_ref[W2_ROW:W2_ROW + WIDTH, :]                   # [128, 128]
    W3 = p_ref[W3_ROW:W3_ROW + WIDTH, :]                   # [128, 128]
    b1 = p_ref[B1_ROW:B1_ROW + 1, :]                       # [1, 128]
    b2 = p_ref[B2_ROW:B2_ROW + 1, :]
    b3 = p_ref[B3_ROW:B3_ROW + 1, :]

    # Fused critic+actor towers: lanes 0..63 = critic, 64..127 = actor.
    h1 = jnp.tanh(jnp.dot(x, W1, preferred_element_type=jnp.float32) + b1)
    h2 = jnp.tanh(jnp.dot(h1, W2, preferred_element_type=jnp.float32) + b2)
    # Head: col0=value, cols1..6=logits, cols64..127=actor features (identity).
    head = jnp.dot(h2, W3, preferred_element_type=jnp.float32) + b3    # [TB,128]

    tb = head.shape[0]
    lane = jax.lax.broadcasted_iota(jnp.int32, (tb, WIDTH), 1)
    is_logit = (lane >= LOGIT_COL) & (lane < LOGIT_COL + N_ACT)

    # Categorical epilogue over the 6 logit lanes (full-width, masked).
    neg = jnp.float32(-1e30)
    masked = jnp.where(is_logit, head, neg)
    m = jnp.max(masked, axis=-1, keepdims=True)            # row max logit
    e = jnp.exp(masked - m)                                 # 0 off the logit lanes
    s = jnp.sum(e, axis=-1, keepdims=True)
    log_s = jnp.log(s)
    probs = e / s
    log_probs = masked - m - log_s
    plogp = jnp.where(is_logit, probs * log_probs, 0.0)
    entropy = -jnp.sum(plogp, axis=-1, keepdims=True)       # [TB,1]

    # Deterministic action = first-occurrence argmax over logit lanes.
    cand = jnp.where((masked == m) & is_logit,
                     (lane - LOGIT_COL).astype(jnp.float32),
                     jnp.float32(1e9))
    action = jnp.min(cand, axis=-1, keepdims=True)          # [TB,1], float index
    action_log_prob = -log_s                                 # log-prob of argmax

    # Assemble the lane-dense slab in-register, single unmasked store.
    out = head
    out = jnp.where(lane == ACTION_COL, action, out)
    out = jnp.where(lane == ALP_COL, action_log_prob, out)
    out = jnp.where(lane == ENT_COL, entropy, out)
    out_ref[...] = out


def _run_policy(inputs, packed_params):
    """Runs the fused policy kernel; returns the [B, 128] output slab."""
    B = inputs.shape[0]
    Bp = max(8, -(-B // 8) * 8)          # pad batch to a multiple of 8 sublanes
    TB = min(Bp, 128)                     # batch tile (parallel grid for big B)
    Bp = -(-Bp // TB) * TB
    x = inputs.astype(jnp.float32)
    if Bp != B:
        x = jnp.pad(x, ((0, Bp - B), (0, 0)))

    cost = pl.CostEstimate(
        flops=2 * Bp * (D_IN * WIDTH + 2 * WIDTH * WIDTH),
        transcendentals=3 * Bp * WIDTH + Bp,
        bytes_accessed=4 * (Bp * D_IN + P_ROWS * WIDTH + Bp * WIDTH),
    )

    out = pl.pallas_call(
        _policy_kernel,
        out_shape=jax.ShapeDtypeStruct((Bp, WIDTH), jnp.float32),
        grid_spec=pltpu.PrefetchScalarGridSpec(
            num_scalar_prefetch=0,
            grid=(Bp // TB,),
            in_specs=[
                pl.BlockSpec((TB, D_IN), lambda i: (i, 0)),      # activations
                pl.BlockSpec((P_ROWS, WIDTH), lambda i: (0, 0)),  # packed params
            ],
            out_specs=pl.BlockSpec((TB, WIDTH), lambda i: (i, 0)),
        ),
        compiler_params=pltpu.CompilerParams(
            dimension_semantics=("parallel",)),
        cost_estimate=cost,
    )(x, packed_params)
    return out[:B]


def ff_policy_forward(inputs, states, masks, packed_params):
    """Returns (value [B,1], actor_features [B,HID], logits [B,A], states)."""
    del masks  # unused in the feed-forward (non-GRU) path
    out = _run_policy(inputs, packed_params)
    value = out[:, VALUE_COL:VALUE_COL + 1]
    feat = out[:, FEAT_COL:FEAT_COL + HID]
    logits = out[:, LOGIT_COL:LOGIT_COL + N_ACT]
    return value, feat, logits, states


def act(inputs, states, masks, packed_params, deterministic=True):
    del masks
    out = _run_policy(inputs, packed_params)
    value = out[:, VALUE_COL:VALUE_COL + 1]
    action = out[:, ACTION_COL:ACTION_COL + 1].astype(jnp.int32)
    action_log_probs = out[:, ALP_COL:ALP_COL + 1]
    dist_entropy = jnp.mean(out[:, ENT_COL])
    # TODO(synk): stochastic multinomial sampling (deterministic=False) not
    # implemented; deterministic mode matches dist.sample(..., deterministic=True).
    return value, action, action_log_probs, states, dist_entropy


def _init_params(key):
    """Deterministic PyTorch-nn.Linear-style init (uniform +-1/sqrt(fan_in))."""
    ks = jax.random.split(key, 12)

    def lin(kw, kb, fan_in, fan_out):
        bound = 1.0 / (fan_in ** 0.5)
        W = jax.random.uniform(kw, (fan_in, fan_out), jnp.float32, -bound, bound)
        b = jax.random.uniform(kb, (1, fan_out), jnp.float32, -bound, bound)
        return W, b

    vW1, vb1 = lin(ks[0], ks[1], D_IN, HID)
    vW2, vb2 = lin(ks[2], ks[3], HID, HID)
    vW3, vb3 = lin(ks[4], ks[5], HID, 1)
    aW1, ab1 = lin(ks[6], ks[7], D_IN, HID)
    aW2, ab2 = lin(ks[8], ks[9], HID, HID)
    dW, db = lin(ks[10], ks[11], HID, N_ACT)
    return dict(vW1=vW1, vb1=vb1, vW2=vW2, vb2=vb2, vW3=vW3, vb3=vb3,
                aW1=aW1, ab1=ab1, aW2=aW2, ab2=ab2, dW=dW, db=db)


def pack_params(p):
    """Packs all 13 tensors into one lane-dense [P_ROWS, 128] f32 operand."""
    W1p = jnp.zeros((D_IN, WIDTH), jnp.float32)
    W1p = W1p.at[:, :HID].set(p["vW1"]).at[:, HID:].set(p["aW1"])

    W2p = jnp.zeros((WIDTH, WIDTH), jnp.float32)
    W2p = W2p.at[:HID, :HID].set(p["vW2"]).at[HID:, HID:].set(p["aW2"])

    W3p = jnp.zeros((WIDTH, WIDTH), jnp.float32)
    W3p = W3p.at[:HID, VALUE_COL:VALUE_COL + 1].set(p["vW3"])
    W3p = W3p.at[HID:, LOGIT_COL:LOGIT_COL + N_ACT].set(p["dW"])
    W3p = W3p.at[HID:, HID:].set(jnp.eye(HID, dtype=jnp.float32))  # feat pass-thru

    b1p = jnp.concatenate([p["vb1"], p["ab1"]], axis=-1)            # [1,128]
    b2p = jnp.concatenate([p["vb2"], p["ab2"]], axis=-1)
    b3p = jnp.zeros((1, WIDTH), jnp.float32)
    b3p = b3p.at[:, VALUE_COL:VALUE_COL + 1].set(p["vb3"])
    b3p = b3p.at[:, LOGIT_COL:LOGIT_COL + N_ACT].set(p["db"])

    pad = jnp.zeros((P_ROWS - (D_IN + 2 * WIDTH + 3), WIDTH), jnp.float32)
    return jnp.concatenate([W1p, W2p, W3p, b1p, b2p, b3p, pad], axis=0)


if __name__ == "__main__":
    key = jax.random.PRNGKey(0)
    k_p, k_x = jax.random.split(key)
    raw = _init_params(k_p)
    packed = pack_params(raw)

    B = 8
    inputs = jax.random.normal(k_x, (B, D_IN), jnp.float32)
    states = jnp.zeros((B, 1), jnp.float32)
    masks = jnp.ones((B, 1), jnp.float32)

    value, action, action_log_probs, states_out, dist_entropy = act(
        inputs, states, masks, packed, deterministic=True)
    jax.block_until_ready((value, action, action_log_probs, states_out,
                           dist_entropy))

    # Pure-JAX reference of the same math.
    def ref(x, p):
        h = jnp.tanh(x @ p["vW1"] + p["vb1"])
        h = jnp.tanh(h @ p["vW2"] + p["vb2"])
        v = h @ p["vW3"] + p["vb3"]
        a = jnp.tanh(x @ p["aW1"] + p["ab1"])
        a = jnp.tanh(a @ p["aW2"] + p["ab2"])
        return v, a, a @ p["dW"] + p["db"]

    v_ref, feat_ref, logits_ref = ref(inputs, raw)
    v_k, feat_k, logits_k, _ = ff_policy_forward(inputs, states, masks, packed)
    assert jnp.allclose(v_k, v_ref, atol=1e-5)
    assert jnp.allclose(feat_k, feat_ref, atol=1e-5)
    assert jnp.allclose(logits_k, logits_ref, atol=1e-5)

    lp_ref = jax.nn.log_softmax(logits_ref, axis=-1)
    probs_ref = jnp.exp(lp_ref)
    act_ref = jnp.argmax(logits_ref, axis=-1, keepdims=True)
    alp_ref = jnp.take_along_axis(lp_ref, act_ref, axis=-1)
    ent_ref = -(probs_ref * lp_ref).sum(-1).mean()
    assert jnp.array_equal(action, act_ref.astype(jnp.int32))
    assert jnp.allclose(action_log_probs, alp_ref, atol=1e-4)
    assert jnp.allclose(dist_entropy, ent_ref, atol=1e-4)
    assert jnp.allclose(value, v_ref, atol=1e-5)
    print("KERNEL_OK")
</pallas_src>

<mosaic_0001>
module attributes {stable_mosaic.version = 11 : i64} {
  func.func @_policy_kernel(%arg0: i32, %arg1: memref<8x32xf32, #tpu.memory_space<vmem>>, %arg2: memref<296x128xf32, #tpu.memory_space<vmem>>, %arg3: memref<8x128xf32, #tpu.memory_space<vmem>>) attributes {dimension_semantics = [#tpu.dimension_semantics<parallel>], iteration_bounds = array<i64: 1>, scalar_prefetch = 0 : i64, scratch_operands = 0 : i64, tpu.core_type = #tpu.core_type<tc>, window_params = [{transform_indices = @transform_0, window_bounds = array<i64: 8, 32>}, {pipeline_mode = #tpu.pipeline_mode<synchronous>, transform_indices = @transform_1, window_bounds = array<i64: 296, 128>}, {transform_indices = @transform_2, window_bounds = array<i64: 8, 128>}]} {
    %c0 = arith.constant 0 : index
    %c0_0 = arith.constant 0 : index
    %0 = vector.load %arg1[%c0, %c0_0] : memref<8x32xf32, #tpu.memory_space<vmem>>, vector<8x32xf32>
    %c0_1 = arith.constant 0 : index
    %c0_2 = arith.constant 0 : index
    %1 = vector.load %arg2[%c0_1, %c0_2] : memref<296x128xf32, #tpu.memory_space<vmem>>, vector<32x128xf32>
    %c32 = arith.constant 32 : index
    %c0_3 = arith.constant 0 : index
    %2 = vector.load %arg2[%c32, %c0_3] : memref<296x128xf32, #tpu.memory_space<vmem>>, vector<128x128xf32>
    %c160 = arith.constant 160 : index
    %c0_4 = arith.constant 0 : index
    %3 = vector.load %arg2[%c160, %c0_4] : memref<296x128xf32, #tpu.memory_space<vmem>>, vector<128x128xf32>
    %c288 = arith.constant 288 : index
    %c0_5 = arith.constant 0 : index
    %4 = vector.load %arg2[%c288, %c0_5] : memref<296x128xf32, #tpu.memory_space<vmem>>, vector<1x128xf32>
    %c289 = arith.constant 289 : index
    %c0_6 = arith.constant 0 : index
    %5 = vector.load %arg2[%c289, %c0_6] : memref<296x128xf32, #tpu.memory_space<vmem>>, vector<1x128xf32>
    %c290 = arith.constant 290 : index
    %c0_7 = arith.constant 0 : index
    %6 = vector.load %arg2[%c290, %c0_7] : memref<296x128xf32, #tpu.memory_space<vmem>>, vector<1x128xf32>
    %cst = arith.constant dense<0.000000e+00> : vector<8x128xf32>
    %7 = tpu.matmul %0, %1, %cst {dimension_numbers = #tpu.dot_dimension_numbers<[1], [0], [0], [1], [0, 0, 1, 1], [], []>} : vector<8x32xf32>, vector<32x128xf32>, vector<8x128xf32> -> vector<8x128xf32>
    %8 = vector.broadcast %4 : vector<1x128xf32> to vector<8x128xf32>
    %9 = arith.addf %7, %8 : vector<8x128xf32>
    %10 = math.tanh %9 : vector<8x128xf32>
    %cst_8 = arith.constant dense<0.000000e+00> : vector<8x128xf32>
    %11 = tpu.matmul %10, %2, %cst_8 {dimension_numbers = #tpu.dot_dimension_numbers<[1], [0], [0], [1], [0, 0, 1, 1], [], []>} : vector<8x128xf32>, vector<128x128xf32>, vector<8x128xf32> -> vector<8x128xf32>
    %12 = vector.broadcast %5 : vector<1x128xf32> to vector<8x128xf32>
    %13 = arith.addf %11, %12 : vector<8x128xf32>
    %14 = math.tanh %13 : vector<8x128xf32>
    %cst_9 = arith.constant dense<0.000000e+00> : vector<8x128xf32>
    %15 = tpu.matmul %14, %3, %cst_9 {dimension_numbers = #tpu.dot_dimension_numbers<[1], [0], [0], [1], [0, 0, 1, 1], [], []>} : vector<8x128xf32>, vector<128x128xf32>, vector<8x128xf32> -> vector<8x128xf32>
    %16 = vector.broadcast %6 : vector<1x128xf32> to vector<8x128xf32>
    %17 = arith.addf %15, %16 : vector<8x128xf32>
    %18 = tpu.iota {dimensions = array<i32: 1>} : vector<8x128xi32>
    %c1_i32 = arith.constant 1 : i32
    %19 = vector.broadcast %c1_i32 : i32 to vector<8x128xi32>
    %20 = arith.cmpi sge, %18, %19 : vector<8x128xi32>
    %c7_i32 = arith.constant 7 : i32
    %21 = vector.broadcast %c7_i32 : i32 to vector<8x128xi32>
    %22 = arith.cmpi slt, %18, %21 : vector<8x128xi32>
    %23 = arith.andi %20, %22 : vector<8x128xi1>
    %cst_10 = arith.constant -1.000000e+30 : f32
    %24 = vector.broadcast %cst_10 : f32 to vector<8x128xf32>
    %25 = arith.select %23, %17, %24 : vector<8x128xi1>, vector<8x128xf32>
    %cst_11 = arith.constant dense<0xFF800000> : vector<8xf32>
    %26 = vector.multi_reduction <maximumf>, %25, %cst_11 [1] : vector<8x128xf32> to vector<8xf32>
    %27 = vector.shape_cast %26 : vector<8xf32> to vector<8x1xf32>
    %28 = vector.broadcast %27 : vector<8x1xf32> to vector<8x128xf32>
    %29 = arith.subf %25, %28 : vector<8x128xf32>
    %30 = math.exp %29 : vector<8x128xf32>
    %cst_12 = arith.constant dense<0.000000e+00> : vector<8xf32>
    %31 = vector.multi_reduction <add>, %30, %cst_12 [1] : vector<8x128xf32> to vector<8xf32>
    %32 = vector.shape_cast %31 : vector<8xf32> to vector<8x1xf32>
    %33 = math.log %32 : vector<8x1xf32>
    %34 = vector.broadcast %32 : vector<8x1xf32> to vector<8x128xf32>
    %35 = arith.divf %30, %34 : vector<8x128xf32>
    %36 = vector.broadcast %27 : vector<8x1xf32> to vector<8x128xf32>
    %37 = arith.subf %25, %36 : vector<8x128xf32>
    %38 = vector.broadcast %33 : vector<8x1xf32> to vector<8x128xf32>
    %39 = arith.subf %37, %38 : vector<8x128xf32>
    %40 = arith.mulf %35, %39 : vector<8x128xf32>
    %cst_13 = arith.constant 0.000000e+00 : f32
    %41 = vector.broadcast %cst_13 : f32 to vector<8x128xf32>
    %42 = arith.select %23, %40, %41 : vector<8x128xi1>, vector<8x128xf32>
    %cst_14 = arith.constant dense<0.000000e+00> : vector<8xf32>
    %43 = vector.multi_reduction <add>, %42, %cst_14 [1] : vector<8x128xf32> to vector<8xf32>
    %44 = vector.shape_cast %43 : vector<8xf32> to vector<8x1xf32>
    %cst_15 = arith.constant 0.000000e+00 : f32
    %45 = vector.broadcast %cst_15 : f32 to vector<8x1xf32>
    %46 = arith.subf %45, %44 : vector<8x1xf32>
    %47 = vector.broadcast %27 : vector<8x1xf32> to vector<8x128xf32>
    %48 = arith.cmpf oeq, %25, %47 : vector<8x128xf32>
    %49 = arith.andi %48, %23 : vector<8x128xi1>
    %c1_i32_16 = arith.constant 1 : i32
    %50 = vector.broadcast %c1_i32_16 : i32 to vector<8x128xi32>
    %51 = arith.subi %18, %50 : vector<8x128xi32>
    %52 = arith.sitofp %51 : vector<8x128xi32> to vector<8x128xf32>
    %cst_17 = arith.constant 1.000000e+09 : f32
    %53 = vector.broadcast %cst_17 : f32 to vector<8x128xf32>
    %54 = arith.select %49, %52, %53 : vector<8x128xi1>, vector<8x128xf32>
    %cst_18 = arith.constant dense<0x7F800000> : vector<8xf32>
    %55 = vector.multi_reduction <minimumf>, %54, %cst_18 [1] : vector<8x128xf32> to vector<8xf32>
    %56 = vector.shape_cast %55 : vector<8xf32> to vector<8x1xf32>
    %cst_19 = arith.constant 0.000000e+00 : f32
    %57 = vector.broadcast %cst_19 : f32 to vector<8x1xf32>
    %58 = arith.subf %57, %33 : vector<8x1xf32>
    %c7_i32_20 = arith.constant 7 : i32
    %59 = vector.broadcast %c7_i32_20 : i32 to vector<8x128xi32>
    %60 = arith.cmpi eq, %18, %59 : vector<8x128xi32>
    %61 = vector.shape_cast %56 : vector<8x1xf32> to vector<8x1xf32>
    %62 = vector.broadcast %61 : vector<8x1xf32> to vector<8x128xf32>
    %63 = arith.select %60, %62, %17 : vector<8x128xi1>, vector<8x128xf32>
    %c8_i32 = arith.constant 8 : i32
    %64 = vector.broadcast %c8_i32 : i32 to vector<8x128xi32>
    %65 = arith.cmpi eq, %18, %64 : vector<8x128xi32>
    %66 = vector.shape_cast %58 : vector<8x1xf32> to vector<8x1xf32>
    %67 = vector.broadcast %66 : vector<8x1xf32> to vector<8x128xf32>
    %68 = arith.select %65, %67, %63 : vector<8x128xi1>, vector<8x128xf32>
    %c9_i32 = arith.constant 9 : i32
    %69 = vector.broadcast %c9_i32 : i32 to vector<8x128xi32>
    %70 = arith.cmpi eq, %18, %69 : vector<8x128xi32>
    %71 = vector.shape_cast %46 : vector<8x1xf32> to vector<8x1xf32>
    %72 = vector.broadcast %71 : vector<8x1xf32> to vector<8x128xf32>
    %73 = arith.select %70, %72, %68 : vector<8x128xi1>, vector<8x128xf32>
    %c0_21 = arith.constant 0 : index
    %c0_22 = arith.constant 0 : index
    %74 = vector.load %arg3[%c0_21, %c0_22] : memref<8x128xf32, #tpu.memory_space<vmem>>, vector<8x128xf32>
    tpu.vector_store %arg3[%c0_21, %c0_22], %73 {strides = array<i32>} : memref<8x128xf32, #tpu.memory_space<vmem>>, vector<8x128xf32>,
    return
  }
  func.func @transform_0(%arg0: i32) -> (i32, i32) {
    %c0_i32 = arith.constant 0 : i32
    %c0_i32_0 = arith.constant 0 : i32
    return %arg0, %c0_i32 : i32, i32
  }
  func.func @transform_1(%arg0: i32) -> (i32, i32) {
    %c0_i32 = arith.constant 0 : i32
    %c0_i32_0 = arith.constant 0 : i32
    %c0_i32_1 = arith.constant 0 : i32
    return %c0_i32, %c0_i32_0 : i32, i32
  }
  func.func @transform_2(%arg0: i32) -> (i32, i32) {
    %c0_i32 = arith.constant 0 : i32
    %c0_i32_0 = arith.constant 0 : i32
    return %arg0, %c0_i32 : i32, i32
  }
}

</mosaic_0001>

<bundles_post_ra>
// kernel: tpu_custom_call.1
= control target key start
LH: loop header
LB: loop body
LE: loop exit
PB: predicated region body
PF: predicated region fallthrough
CT: control target
= control target key end

     0   :  { %7 = vsyncpa [#allocation3], 0  ;;  %s726_s0 = inlined_call_operand.hbm [shape: f32[8,32], index: 0, kind: input, shape index: {}]   ;;  %s727_s1 = inlined_call_operand.hbm [shape: f32[296,128], index: 1, kind: input, shape index: {}]   ;;  %s728_s2 = inlined_call_operand.hbm [shape: f32[8,128], index: 2, kind: output, shape index: {}]  }
   0x1   :  { %8 = vsyncpa [#allocation6], 0 }
   0x2   :  { %9 = vsyncpa [#allocation4], 0  ;;  %s629_s9 = smov [#allocation2]   ;;  %s630_s11 = smov [#allocation5]  }
   0x3   :  { %s16_s10 = sshll.u32 %s629_s9, 4  ;;  %s25_s12 = sshll.u32 %s630_s11, 4  ;;  %s17_s10 = int_to_ptr.vmem [resolvable:$true] %s16_s10  ;;  %s652_s12 = int_to_ptr.vmem [resolvable:$true] %s25_s12 }
   0x4   :  { %s557_s15 = scalar_lea.hbm %s726_s0, 128 }
   0x5   :  { %p558_p0 = scmp.ne.s32.totalorder %s726_s0, %s557_s15  ;;  %p561_p1 = scmp.lt.u32.totalorder %s557_s15, %s726_s0 }
   0x7   :  { %p563_p2 = pnand %p561_p1, %p558_p0 }
   0x9   :  { %566 = shalt.err (!%p563_p2)
}
   0xa   :  { %s567_s20 = scalar_lea.vmem %s17_s10, 128  ;;  %p572_p4 = scmp.lt.s32.totalorder %s17_s10, %s17_s10 }
   0xb   :  { %p568_p3 = scmp.ne.s32.totalorder %s17_s10, %s567_s20  ;;  %p573_p5 = scmp.lt.s32.totalorder %s567_s20, %s567_s20 }
   0xd   :  { %p574_p6 = por %p573_p5, %p572_p4 }
   0xf   :  { %p575_p7 = pnand %p574_p6, %p568_p3 }
  0x11   :  { %578 = shalt.err (!%p575_p7)
}
  0x12   :  { %19 = dma.hbm_to_vmem [thread:$0]  %s726_s0, 128, %s17_s10, [#allocation3]  }
  0x13   :  { %s579_s25 = scalar_lea.hbm %s727_s1, 4736 }
  0x14   :  { %p580_p8 = scmp.ne.s32.totalorder %s727_s1, %s579_s25  ;;  %p583_p9 = scmp.lt.u32.totalorder %s579_s25, %s727_s1 }
  0x16   :  { %p585_p10 = pnand %p583_p9, %p580_p8 }
  0x18   :  { %588 = shalt.err (!%p585_p10)
}
  0x19   :  { %s589_s30 = scalar_lea.vmem %s652_s12, 4736  ;;  %p594_p12 = scmp.lt.s32.totalorder %s652_s12, %s652_s12 }
  0x1a   :  { %p590_p11 = scmp.ne.s32.totalorder %s652_s12, %s589_s30  ;;  %p595_p13 = scmp.lt.s32.totalorder %s589_s30, %s589_s30 }
  0x1c   :  { %p596_p0 = por %p595_p13, %p594_p12 }
  0x1e   :  { %p597_p1 = pnand %p596_p0, %p590_p11 }
  0x20   :  { %600 = shalt.err (!%p597_p1)
}
  0x21   :  { %s631_s0 = smov 128   ;;  %s632_s3 = smov 8  }
  0x22   :  { %31 = dma.hbm_to_vmem [thread:$0]  %s727_s1, 4736, %s652_s12, [#allocation6], %s631_s0, %s631_s0, %s632_s3  }
  0x23   :  { %623 = dma.done.wait [#allocation3], 128  }
  0x24   :  { %624 = vsyncadd [#allocation3], 4294967168 }
  0x25   :  { %625 = dma.done.wait [#allocation6], 4736  }
  0x26   :  { %626 = vsyncadd [#allocation6], 4294962560  ;;  %v633_v0 = vmov 0.0|0.0   ;;  %vm634_vm0 = vmmov 0   ;;  %v635_v1 = vmov 0.0   ;;  %v39_v2 = vld [vmem:[#allocation5] sm:$0xff] }
  0x27   :  { %485 = vmatprep.subr.bf16.mxu0 %v633_v0  ;;  %412 = vmatprep.mubr.msk.f32.mxu0 %vm634_vm0, %v635_v1  ;;  %v40_v3 = vld [vmem:[#allocation5 + $0x8] sm:$0xff]  ;;  %v41_v4 = vld [vmem:[#allocation5 + $0x10] sm:$0xff]  ;;  %v42_v6 = vld [vmem:[#allocation5 + $0x18] sm:$0xff]  ;;  %vm82_vm1 = vcmask 261120   ;;  %s636_s1 = smov [#allocation7]  }
  0x28   :  { %491 = vmatprep.subr.bf16.mxu1 %v633_v0  ;;  %447 = vmatprep.mubr.msk.f32.mxu1 %vm634_vm0, %v635_v1  ;;  %v486_v5 = vpack.c.bf16 %v40_v3, %v39_v2  ;;  %v43_v7 = vld [vmem:[#allocation5 + $0x20] sm:$0xff]  ;;  %v44_v8 = vld [vmem:[#allocation5 + $0x28] sm:$0xff]  ;;  %v45_v9 = vld [vmem:[#allocation5 + $0x30] sm:$0xff]  ;;  %v489_v11 = vpack.c.bf16 %v42_v6, %v41_v4  ;;  %v306_v4 = vlaneseq  ;;  %s350_s6 = sshll.u32 %s636_s1, 4  ;;  %s351_s6 = int_to_ptr.vmem [resolvable:$true] %s350_s6 }
  0x29   :  { %v46_v10 = vld [vmem:[#allocation5 + $0x38] sm:$0xff]  ;;  %v492_v12 = vpack.c.bf16 %v44_v8, %v43_v7  ;;  %v47_v14 = vld [vmem:[#allocation5 + $0x40] sm:$0xff]  ;;  %v48_v15 = vld [vmem:[#allocation5 + $0x48] sm:$0xff]  ;;  %s601_s7 = scalar_lea.vmem %s351_s6, 128  ;;  %p606_p3 = scmp.lt.s32.totalorder %s351_s6, %s351_s6 }
  0x2a   :  { %487 = vmatpush3.bf16.msra.mxu0 %v486_v5  ;;  %v495_v13 = vpack.c.bf16 %v46_v10, %v45_v9  ;;  %v38_v16 = vld [vmem:[#allocation2] sm:$0xff]  ;;  %v498_v17 = vpack.c.bf16 %v48_v15, %v47_v14  ;;  %v49_v18 = vld [vmem:[#allocation5 + $0x50] sm:$0xff]  ;;  %v51_v21 = vld [vmem:[#allocation5 + $0x60] sm:$0xff]  ;;  %v307_v5 = vand.u32 127, %v306_v4  ;;  %p602_p2 = scmp.ne.s32.totalorder %s351_s6, %s601_s7  ;;  %p607_p4 = scmp.lt.s32.totalorder %s601_s7, %s601_s7 }
  0x2b   :  { %488 = vmatprep.subr.bf16.mxu0 %v633_v0  ;;  %493 = vmatpush3.bf16.msra.mxu1 %v492_v12  ;;  %v50_v19 = vld [vmem:[#allocation5 + $0x58] sm:$0xff]  ;;  %v52_v22 = vld [vmem:[#allocation5 + $0x68] sm:$0xff]  ;;  %v53_v24 = vld [vmem:[#allocation5 + $0x70] sm:$0xff] }
  0x2c   :  { %494 = vmatprep.subr.bf16.mxu1 %v633_v0  ;;  %v501_v20 = vpack.c.bf16 %v50_v19, %v49_v18  ;;  %v504_v23 = vpack.c.bf16 %v52_v22, %v51_v21  ;;  %v54_v25 = vld [vmem:[#allocation5 + $0x78] sm:$0xff]  ;;  %v55_v27 = vld [vmem:[#allocation5 + $0x80] sm:$0xff]  ;;  %v56_v28 = vld [vmem:[#allocation5 + $0x88] sm:$0xff]  ;;  %vm308_vm2 = vcmp.ge.s32.totalorder %v307_v5, 1  ;;  %vm309_vm3 = vcmp.lt.s32.totalorder %v307_v5, 7  ;;  %p608_p5 = por %p607_p4, %p606_p3 }
  0x2d   :  { %v507_v26 = vpack.c.bf16 %v54_v25, %v53_v24  ;;  %v510_v29 = vpack.c.bf16 %v56_v28, %v55_v27  ;;  %v57_v30 = vld [vmem:[#allocation5 + $0x90] sm:$0xff]  ;;  %v58_v31 = vld [vmem:[#allocation5 + $0x98] sm:$0xff]  ;;  %v59_v33 = vld [vmem:[#allocation5 + $0xa0] sm:$0xff]  ;;  %v364_v21 = vadd.s32 4294967295, %v307_v5  ;;  %vm337_vm7 = vcmp.eq.s32.totalorder %v307_v5, 7 }
  0x2e   :  { %490 = vmatpush3.bf16.msra.mxu0 %v489_v11  ;;  %v513_v32 = vpack.c.bf16 %v58_v31, %v57_v30  ;;  %v60_v34 = vld [vmem:[#allocation5 + $0xa8] sm:$0xff]  ;;  %v61_v35 = vld [vmem:[#allocation5 + $0xb0] sm:$0xff]  ;;  %v62_v37 = vld [vmem:[#allocation5 + $0xb8] sm:$0xff]  ;;  %vm339_vm8 = vcmp.eq.s32.totalorder %v307_v5, 8  ;;  %vm341_vm9 = vcmp.eq.s32.totalorder %v307_v5, 9  ;;  %p609_p6 = pnand %p608_p5, %p602_p2 }
  0x2f   :  { %515 = vmatprep.subr.bf16.mxu0 %v633_v0  ;;  %496 = vmatpush3.bf16.msra.mxu1 %v495_v13  ;;  %v516_v36 = vpack.c.bf16 %v60_v34, %v59_v33  ;;  %v519_v38 = vpack.c.bf16 %v62_v37, %v61_v35  ;;  %v63_v39 = vld [vmem:[#allocation5 + $0xc0] sm:$0xff]  ;;  %v64_v40 = vld [vmem:[#allocation5 + $0xc8] sm:$0xff]  ;;  %v65_v42 = vld [vmem:[#allocation5 + $0xd0] sm:$0xff]  ;;  %v332_v24 = vcvt.s32.f32 %v364_v21 }
  0x30   :  { %497 = vmatprep.subr.bf16.mxu1 %v633_v0  ;;  %v522_v41 = vpack.c.bf16 %v64_v40, %v63_v39  ;;  %v66_v43 = vld [vmem:[#allocation5 + $0xd8] sm:$0xff]  ;;  %v67_v45 = vld [vmem:[#allocation5 + $0xe0] sm:$0xff]  ;;  %v68_v46 = vld [vmem:[#allocation5 + $0xe8] sm:$0xff] }
  0x31   :  { %413 = vmatmul.mubr.msk.f32.vlgmr.msra.gmra.mrb[0].mxu0 %vm82_vm1, %v38_v16  ;;  %v525_v44 = vpack.c.bf16 %v66_v43, %v65_v42  ;;  %v528_v47 = vpack.c.bf16 %v68_v46, %v67_v45  ;;  %v360_v48 = vld [vmem:[#allocation5 + $0x120] ss:$0 sm:$0xff]  ;;  %v69_v53 = vld [vmem:[#allocation5 + $0xf0] sm:$0xff]  ;;  %v70_v54 = vld [vmem:[#allocation5 + $0xf8] sm:$0xff] }
  0x32   :  { %482 = vmatprep.mubr.msk.f32.mxu0 %vm634_vm0, %v635_v1  ;;  %517 = vmatpush3.bf16.msra.mxu0 %v516_v36  ;;  %v531_v55 = vpack.c.bf16 %v70_v54, %v69_v53  ;;  %v71_v56 = vld [vmem:[#allocation5 + $0x100] sm:$0xff]  ;;  %v72_v57 = vld [vmem:[#allocation5 + $0x108] sm:$0xff]  ;;  %v73_v59 = vld [vmem:[#allocation5 + $0x110] sm:$0xff] }
  0x33   :  { %499 = vmatpush3.bf16.msra.mxu1 %v498_v17  ;;  %518 = vmatprep.subr.bf16.mxu0 %v633_v0  ;;  %v534_v58 = vpack.c.bf16 %v72_v57, %v71_v56  ;;  %v74_v60 = vld [vmem:[#allocation5 + $0x118] sm:$0xff]  ;;  %v362_v62 = vld [vmem:[#allocation5 + $0x121] ss:$0 sm:$0xff]  ;;  %v363_v6 = vld [vmem:[#allocation5 + $0x122] ss:$0 sm:$0xff] }
  0x34   :  { %500 = vmatprep.subr.bf16.mxu1 %v633_v0  ;;  %v537_v61 = vpack.c.bf16 %v74_v60, %v73_v59  ;;  %vm704_vm4 = vmand %vm308_vm2, %vm309_vm3 }
  0x36   :  { %520 = vmatpush3.bf16.msra.mxu0 %v519_v38 }
  0x37   :  { %502 = vmatpush3.bf16.msra.mxu1 %v501_v20  ;;  %521 = vmatprep.subr.bf16.mxu0 %v633_v0 }
  0x38   :  { %503 = vmatprep.subr.bf16.mxu1 %v633_v0 }
  0x3a   :  { %523 = vmatpush3.bf16.msra.mxu0 %v522_v41 }
  0x3b   :  { %505 = vmatpush3.bf16.msra.mxu1 %v504_v23  ;;  %524 = vmatprep.subr.bf16.mxu0 %v633_v0 }
  0x3c   :  { %506 = vmatprep.subr.bf16.mxu1 %v633_v0 }
  0x3e   :  { %526 = vmatpush3.bf16.msra.mxu0 %v525_v44 }
  0x3f   :  { %508 = vmatpush3.bf16.msra.mxu1 %v507_v26  ;;  %527 = vmatprep.subr.bf16.mxu0 %v633_v0 }
  0x40   :  { %509 = vmatprep.subr.bf16.mxu1 %v633_v0 }
  0x42   :  { %529 = vmatpush3.bf16.msra.mxu0 %v528_v47 }
  0x43   :  { %511 = vmatpush3.bf16.msra.mxu1 %v510_v29  ;;  %530 = vmatprep.subr.bf16.mxu0 %v633_v0 }
  0x44   :  { %512 = vmatprep.subr.bf16.mxu1 %v633_v0 }
  0x46   :  { %532 = vmatpush3.bf16.msra.mxu0 %v531_v55 }
  0x47   :  { %514 = vmatpush3.bf16.msra.mxu1 %v513_v32  ;;  %533 = vmatprep.subr.bf16.mxu0 %v633_v0 }
  0x4a   :  { %535 = vmatpush3.bf16.msra.mxu0 %v534_v58 }
  0x4b   :  { %536 = vmatprep.subr.bf16.mxu0 %v633_v0 }
  0x4e   :  { %538 = vmatpush3.bf16.msra.mxu0 %v537_v61 }
 0x104   :  { %v152_v49 = vpop.f32.mrb[0].mxu0 }
 0x105   :  { %v153_v50 = vadd.f32 %v360_v48, %v152_v49  ;;  %v414_v51 = vpop.f32.mrb[1].mxu0 }
 0x107   :  { %547 = vtanh.f32 %v153_v50 }
 0x111   :  { %v548_v52 = vpop.eup %547 }
 0x112   :  { %448 = vmatmul.mubr.f32.vlgmr.msra.gmra.mrb[0].mxu1 %v548_v52 }
 0x1e5   :  { %v227_v63 = vpop.f32.mrb[0].mxu1 }
 0x1e6   :  { %v228_v1 = vadd.f32 %v362_v62, %v227_v63  ;;  %v449_v2 = vpop.f32.mrb[1].mxu1 }
 0x1e8   :  { %549 = vtanh.f32 %v228_v1 }
 0x1f2   :  { %v550_v3 = vpop.eup %549 }
 0x1f3   :  { %483 = vmatmul.mubr.f32.vlgmr.msra.gmra.mrb[2].mxu0 %v550_v3 }
 0x2c6   :  { %v302_v7 = vpop.f32.mrb[2].mxu0 }
 0x2c7   :  { %v303_v9 = vadd.f32 %v363_v6, %v302_v7  ;;  %v484_v0 = vpop.f32.mrb[3].mxu0 }
 0x2c9   :  { %v311_v10 = vsel %vm704_vm4, %v303_v9, -1e+30 }
 0x2ca   :  { %312 = vmax.xlane.f32.xlu0 %v311_v10 }
 0x357   :  { %v313_v11 = vpop.xlane.xlu0 %312 }
 0x358   :  { %v314_v12 = vsub.f32 %v311_v10, %v313_v11  ;;  %vm329_vm5 = vcmp.eq.f32.partialorder %v311_v10, %v313_v11 }
 0x359   :  { %vm330_vm6 = vmand %vm329_vm5, %vm704_vm4 }
 0x35a   :  { %v315_v13 = vmul.f32 1.442695, %v314_v12  ;;  %v333_v25 = vsel %vm330_vm6, %v332_v24, 1e+09 }
 0x35c   :  { %551 = vpow2.f32 %v315_v13 }
 0x366   :  { %v552_v14 = vpop.eup %551 }
 0x367   :  { %317 = vadd.xlane.f32.xlu0 %v552_v14 }
 0x3f4   :  { %v318_v15 = vpop.xlane.xlu0 %317 }
 0x3f5   :  { %553 = vlog2.f32 %v318_v15 }
 0x3f6   :  { %555 = vrcp.f32 %v318_v15 }
 0x3ff   :  { %v554_v16 = vpop.eup %553 }
 0x400   :  { %v556_v17 = vpop.eup %555  ;;  %v320_v18 = vmul.f32 0.6931472, %v554_v16 }
 0x401   :  { %v322_v19 = vmul.f32 %v556_v17, %v552_v14 }
 0x402   :  { %v323_v20 = vsub.f32 %v314_v12, %v320_v18  ;;  %v336_v27 = vsub.f32 0.0, %v320_v18 }
 0x404   :  { %v324_v22 = vmul.f32 %v323_v20, %v322_v19 }
 0x406   :  { %v325_v23 = vsel %vm704_vm4, %v324_v22, 0.0 }
 0x407   :  { %326 = vadd.xlane.f32.xlu1 %v325_v23 }
 0x40b   :  { %334 = vmin.xlane.f32.xlu1 %v333_v25 }
 0x494   :  { %v327_v26 = vpop.xlane.xlu1 %326 }
 0x495   :  { %v328_v29 = vsub.f32 0.0, %v327_v26 }
 0x498   :  { %v335_v28 = vpop.xlane.xlu1 %334 }
 0x499   :  { %v338_v30 = vsel %vm337_vm7, %v335_v28, %v303_v9 }
 0x49a   :  { %v340_v31 = vsel %vm339_vm8, %v336_v27, %v338_v30 }
 0x49b   :  { %v342_v32 = vsel %vm341_vm9, %v328_v29, %v340_v31 }
 0x49c   :  { %343 = vst [vmem:[#allocation7] sm:$0xff] %v342_v32 }
 0x49d   :  { %612 = shalt.err (!%p609_p6)
}
 0x49e   :  { %s613_s10 = scalar_lea.hbm %s728_s2, 128 }
 0x49f   :  { %p614_p7 = scmp.ne.s32.totalorder %s728_s2, %s613_s10  ;;  %p617_p8 = scmp.lt.u32.totalorder %s613_s10, %s728_s2 }
 0x4a1   :  { %p619_p9 = pnand %p617_p8, %p614_p7 }
 0x4a3   :  { %622 = shalt.err (!%p619_p9)
}
 0x4a4   :  { %353 = dma.vmem_to_hbm [thread:$0]  %s351_s6, 128, %s728_s2, [#allocation4]  }
 0x4a5   :  { %627 = dma.done.wait [#allocation4], 128  }
 0x4a6   :  { %628 = vsyncadd [#allocation4], 4294967168 }
 0x4a7   :  { %357 = vsyncpa [#allocation3], 1 }
 0x4a8   :  { %358 = vsyncpa [#allocation6], 1 }
 0x4a9   :  { %359 = vsyncpa [#allocation4], 1 }

</bundles_post_ra>
